<compile_context>
chip_gen: v7x
topology: tpu7x:2x2x1
jax: 0.10.0
libtpu: 0.0.40
codegen_flags: <defaults>
</compile_context>

<pallas_src>
import math

import jax
import jax.numpy as jnp
from jax.experimental import pallas as pl
from jax.experimental.pallas import tpu as pltpu


# ----------------------------------------------------------------------------- kernel
def _critic_kernel(s_ref, a_ref,
                   w1s_ref, w1a_ref, b1_ref,
                   w2_ref, b2_ref,
                   w3_ref, b3_ref,
                   wh_ref, bh_ref,
                   o_ref):
    """Whole ensemble in one shot: lane-packed activations, block-diag weights."""
    cdt = w1s_ref.dtype                      # bf16 MXU operands
    s = s_ref[...].astype(cdt)
    a = a_ref[...].astype(cdt)

    # Layer 1: W1 split into state / action halves -> no concat anywhere.
    h = (jnp.dot(s, w1s_ref[...], preferred_element_type=jnp.float32)
         + jnp.dot(a, w1a_ref[...], preferred_element_type=jnp.float32)
         + b1_ref[...])                      # (tB, P) f32
    h = jnp.maximum(h, 0.0).astype(cdt)

    # Layers 2-3: one block-diagonal (P, P) matmul each.
    h = jnp.dot(h, w2_ref[...], preferred_element_type=jnp.float32) + b2_ref[...]
    h = jnp.maximum(h, 0.0).astype(cdt)
    h = jnp.dot(h, w3_ref[...], preferred_element_type=jnp.float32) + b3_ref[...]
    h = jnp.maximum(h, 0.0).astype(cdt)

    # Head: one block-diagonal (P, E) matmul -> whole (tB, E) slab.
    q = jnp.dot(h, wh_ref[...], preferred_element_type=jnp.float32) + bh_ref[...]

    # Emit (E, tB): B on the lane axis -> lane-dense stores; no wrapper transpose.
    o_ref[...] = q.T.astype(o_ref.dtype)


# ----------------------------------------------------------------------------- wrapper
def _block_diag(blocks):
    rows = sum(b.shape[0] for b in blocks)
    cols = sum(b.shape[1] for b in blocks)
    out = jnp.zeros((rows, cols), blocks[0].dtype)
    r = c = 0
    for b in blocks:
        out = out.at[r:r + b.shape[0], c:c + b.shape[1]].set(b)
        r += b.shape[0]
        c += b.shape[1]
    return out


def pack_params(params, num_critics, state_dim, *, lane_multiple=128,
                weight_dtype=jnp.bfloat16):
    """Pack per-critic (E, in, out) params into lane-packed / block-diag matrices.

    Call ONCE (weights are static across forwards); this is plain XLA.
    lane_multiple=128 is native on v5e (4x128x128 MXU); use 256 on v6e/v7x
    (2x256x256 MXU) when E*H > 128 and not already a multiple of 256 -- at
    E*H <= 128 padding to 256 buys nothing (same single MXU pass).
    """
    (w1, b1), (w2, b2), (w3, b3), (w4, b4) = params
    E = num_critics
    in_dim, H = w1.shape[1], w1.shape[2]
    action_dim = in_dim - state_dim
    EH = E * H
    P = ((EH + lane_multiple - 1) // lane_multiple) * lane_multiple

    def pad_cols(x):
        return jnp.pad(x, [(0, 0)] * (x.ndim - 1) + [(0, P - EH)])

    def pad_rows(x):
        return jnp.pad(x, [(0, P - EH)] + [(0, 0)] * (x.ndim - 1))

    # Layer 1, shared 2-D input: x (B, in_dim) @ (in_dim, P), split state/action.
    w1_packed = pad_cols(jnp.transpose(w1, (1, 0, 2)).reshape(in_dim, EH))
    # Layer 1, per-critic 3-D input: block-diagonal over critics.
    w1s_blk = pad_cols(_block_diag([w1[e, :state_dim, :] for e in range(E)]))
    w1a_blk = pad_cols(_block_diag([w1[e, state_dim:, :] for e in range(E)]))
    b1_p = pad_cols(b1.reshape(1, EH))

    w2_blk = pad_cols(pad_rows(_block_diag([w2[e] for e in range(E)])))
    b2_p = pad_cols(b2.reshape(1, EH))
    w3_blk = pad_cols(pad_rows(_block_diag([w3[e] for e in range(E)])))
    b3_p = pad_cols(b3.reshape(1, EH))

    wh_blk = pad_rows(_block_diag([w4[e] for e in range(E)]))        # (P, E)
    bh_p = b4.reshape(1, E)

    wd = weight_dtype
    return dict(
        num_critics=E, state_dim=state_dim, action_dim=action_dim,
        hidden=H, packed_width=P,
        w1s=w1_packed[:state_dim].astype(wd), w1a=w1_packed[state_dim:].astype(wd),
        w1s_blk=w1s_blk.astype(wd), w1a_blk=w1a_blk.astype(wd),
        b1=b1_p.astype(jnp.float32),
        w2=w2_blk.astype(wd), b2=b2_p.astype(jnp.float32),
        w3=w3_blk.astype(wd), b3=b3_p.astype(jnp.float32),
        wh=wh_blk.astype(wd), bh=bh_p.astype(jnp.float32),
    )


def vectorized_critic_forward(state, action, packed, *, batch_tile=256):
    """Pallas forward pass of VectorizedCritic.

    state:  (B, state_dim) or (E, B, state_dim)
    action: (B, action_dim) or (E, B, action_dim)
    returns q_values: (E, B) float32
    """
    E = packed["num_critics"]
    P = packed["packed_width"]

    if state.ndim == 2:
        B = state.shape[0]
        s_in = state.astype(jnp.float32)
        a_in = action.astype(jnp.float32)
        w1s, w1a = packed["w1s"], packed["w1a"]
    else:
        # TODO(synk): callers with inputs replicated across critics should pass
        # 2-D state/action to avoid the E-fold input packing below.
        assert state.ndim == 3 and state.shape[0] == E, state.shape
        B = state.shape[1]
        s_in = jnp.transpose(state, (1, 0, 2)).reshape(B, -1).astype(jnp.float32)
        a_in = jnp.transpose(action, (1, 0, 2)).reshape(B, -1).astype(jnp.float32)
        w1s, w1a = packed["w1s_blk"], packed["w1a_blk"]

    args = (s_in, a_in, w1s, w1a, packed["b1"], packed["w2"], packed["b2"],
            packed["w3"], packed["b3"], packed["wh"], packed["bh"])
    out_shape = jax.ShapeDtypeStruct((E, B), jnp.float32)

    # Explicit VMEM limit: stays within v7x's 64 MiB physical VMEM with headroom.
    # TODO(synk): if hidden_dim is scaled up (>~1024) the fp32/bf16 weights no
    # longer fit v7x VMEM -- reintroduce a K/N-tiled grid and re-derive the limit.
    vmem_limit = 48 * 1024 * 1024

    if B >= 2 * batch_tile and B % batch_tile == 0:
        # Batch-tiled grid: "parallel" axis shards across v7x's 2 TensorCores and
        # bounds activation VMEM; weight blocks have constant index_maps so they
        # stay VMEM-resident (not re-DMA'd per step).
        sdim, adim = s_in.shape[-1], a_in.shape[-1]
        in_specs = [
            pl.BlockSpec((batch_tile, sdim), lambda i: (i, 0)),
            pl.BlockSpec((batch_tile, adim), lambda i: (i, 0)),
            pl.BlockSpec(w1s.shape, lambda i: (0, 0)),
            pl.BlockSpec(w1a.shape, lambda i: (0, 0)),
            pl.BlockSpec((1, P), lambda i: (0, 0)),
            pl.BlockSpec((P, P), lambda i: (0, 0)),
            pl.BlockSpec((1, P), lambda i: (0, 0)),
            pl.BlockSpec((P, P), lambda i: (0, 0)),
            pl.BlockSpec((1, P), lambda i: (0, 0)),
            pl.BlockSpec((P, E), lambda i: (0, 0)),
            pl.BlockSpec((1, E), lambda i: (0, 0)),
        ]
        out_specs = pl.BlockSpec((E, batch_tile), lambda i: (0, i))
        return pl.pallas_call(
            _critic_kernel,
            out_shape=out_shape,
            grid=(B // batch_tile,),
            in_specs=in_specs,
            out_specs=out_specs,
            compiler_params=pltpu.CompilerParams(
                dimension_semantics=("parallel",),
                vmem_limit_bytes=vmem_limit),
        )(*args)

    # Small batch: grid-less, everything VMEM-resident in a single step.
    vmem = pltpu.MemorySpace.VMEM
    return pl.pallas_call(
        _critic_kernel,
        out_shape=out_shape,
        in_specs=[pl.BlockSpec(memory_space=vmem)] * len(args),
        out_specs=pl.BlockSpec(memory_space=vmem),
        compiler_params=pltpu.CompilerParams(vmem_limit_bytes=vmem_limit),
    )(*args)


# ----------------------------------------------------------------------------- init + reference
def init_params(key, state_dim, action_dim, hidden_dim, num_critics):
    """Deterministic init mirroring VectorizedCritic.__init__ semantics."""
    in_dim = state_dim + action_dim
    E, H = num_critics, hidden_dim

    def kaiming_uniform(k, shape, fan_in):
        bound = 1.0 / math.sqrt(fan_in)       # kaiming_uniform_ with a=sqrt(5)
        return jax.random.uniform(k, shape, jnp.float32, -bound, bound)

    ks = jax.random.split(key, 5)
    w1 = kaiming_uniform(ks[0], (E, in_dim, H), in_dim)
    b1 = jnp.full((E, 1, H), 0.1, jnp.float32)
    w2 = kaiming_uniform(ks[1], (E, H, H), H)
    b2 = jnp.full((E, 1, H), 0.1, jnp.float32)
    w3 = kaiming_uniform(ks[2], (E, H, H), H)
    b3 = jnp.full((E, 1, H), 0.1, jnp.float32)
    w4 = jax.random.uniform(ks[3], (E, H, 1), jnp.float32, -0.003, 0.003)
    b4 = jax.random.uniform(ks[4], (E, 1, 1), jnp.float32, -0.003, 0.003)
    return [(w1, b1), (w2, b2), (w3, b3), (w4, b4)]


def _reference_forward(state, action, params, num_critics, *, mxu_dtype=jnp.float32):
    """Pure-JAX reference.  mxu_dtype=bfloat16 mirrors the kernel's matmul dtype."""
    sa = jnp.concatenate([state, action], axis=-1).astype(jnp.float32)
    if sa.ndim == 2:
        sa = jnp.broadcast_to(sa[None], (num_critics,) + sa.shape)
    (w1, b1), (w2, b2), (w3, b3), (w4, b4) = params

    def layer(x, w, b):
        return jnp.einsum("ebi,eio->ebo", x.astype(mxu_dtype), w.astype(mxu_dtype),
                          preferred_element_type=jnp.float32) + b

    h = jax.nn.relu(layer(sa, w1, b1))
    h = jax.nn.relu(layer(h, w2, b2))
    h = jax.nn.relu(layer(h, w3, b3))
    return layer(h, w4, b4)[..., 0]


# ----------------------------------------------------------------------------- demo / check
if __name__ == "__main__":
    state_dim, action_dim, hidden_dim, num_critics = 12, 4, 32, 4   # E*H = 128
    batch = 8

    key = jax.random.PRNGKey(0)
    k_params, k_state, k_action, k_big = jax.random.split(key, 4)

    params = init_params(k_params, state_dim, action_dim, hidden_dim, num_critics)
    packed = pack_params(params, num_critics, state_dim)

    state = jax.random.normal(k_state, (batch, state_dim), jnp.float32)
    action = jax.random.normal(k_action, (batch, action_dim), jnp.float32)

    # 2-D shared-input path (matches the PyTorch repeat_interleave branch).
    q = vectorized_critic_forward(state, action, packed)
    jax.block_until_ready(q)
    assert q.shape == (num_critics, batch), q.shape

    q_ref_bf16 = _reference_forward(state, action, params, num_critics, mxu_dtype=jnp.bfloat16)
    q_ref_f32 = _reference_forward(state, action, params, num_critics, mxu_dtype=jnp.float32)
    assert jnp.allclose(q, q_ref_bf16, atol=1e-4, rtol=1e-3), "mismatch vs bf16-mirrored ref (2-D)"
    assert jnp.allclose(q, q_ref_f32, atol=5e-4, rtol=5e-2), "mismatch vs f32 ref (2-D, loose)"

    # 3-D pre-replicated per-critic input path.
    state3 = jnp.broadcast_to(state[None], (num_critics,) + state.shape)
    action3 = jnp.broadcast_to(action[None], (num_critics,) + action.shape)
    q3 = vectorized_critic_forward(state3, action3, packed)
    jax.block_until_ready(q3)
    assert jnp.allclose(q3, q_ref_bf16, atol=1e-4, rtol=1e-3), "mismatch vs reference (3-D input)"

    # Larger batch exercises the batch-tiled grid path (parallel axis).
    big_b = 512
    kbs, kba = jax.random.split(k_big)
    state_big = jax.random.normal(kbs, (big_b, state_dim), jnp.float32)
    action_big = jax.random.normal(kba, (big_b, action_dim), jnp.float32)
    q_big = vectorized_critic_forward(state_big, action_big, packed)
    jax.block_until_ready(q_big)
    q_big_ref = _reference_forward(state_big, action_big, params, num_critics,
                                   mxu_dtype=jnp.bfloat16)
    assert q_big.shape == (num_critics, big_b), q_big.shape
    assert jnp.allclose(q_big, q_big_ref, atol=1e-4, rtol=1e-3), "mismatch (grid path)"

    print("KERNEL_OK")
</pallas_src>

<mosaic_0001>
module attributes {stable_mosaic.version = 11 : i64} {
  func.func @_critic_kernel(%arg0: memref<8x12xf32, #tpu.memory_space<vmem>>, %arg1: memref<8x4xf32, #tpu.memory_space<vmem>>, %arg2: memref<12x128xbf16, #tpu.memory_space<vmem>>, %arg3: memref<4x128xbf16, #tpu.memory_space<vmem>>, %arg4: memref<1x128xf32, #tpu.memory_space<vmem>>, %arg5: memref<128x128xbf16, #tpu.memory_space<vmem>>, %arg6: memref<1x128xf32, #tpu.memory_space<vmem>>, %arg7: memref<128x128xbf16, #tpu.memory_space<vmem>>, %arg8: memref<1x128xf32, #tpu.memory_space<vmem>>, %arg9: memref<128x4xbf16, #tpu.memory_space<vmem>>, %arg10: memref<1x4xf32, #tpu.memory_space<vmem>>, %arg11: memref<4x8xf32, #tpu.memory_space<vmem>>) attributes {dimension_semantics = [], scalar_prefetch = 0 : i64, scratch_operands = 0 : i64, tpu.core_type = #tpu.core_type<tc>} {
    %c0 = arith.constant 0 : index
    %c0_0 = arith.constant 0 : index
    %0 = vector.load %arg0[%c0, %c0_0] : memref<8x12xf32, #tpu.memory_space<vmem>>, vector<8x12xf32>
    %1 = arith.truncf %0 : vector<8x12xf32> to vector<8x12xbf16>
    %c0_1 = arith.constant 0 : index
    %c0_2 = arith.constant 0 : index
    %2 = vector.load %arg1[%c0_1, %c0_2] : memref<8x4xf32, #tpu.memory_space<vmem>>, vector<8x4xf32>
    %3 = arith.truncf %2 : vector<8x4xf32> to vector<8x4xbf16>
    %c0_3 = arith.constant 0 : index
    %c0_4 = arith.constant 0 : index
    %4 = vector.load %arg2[%c0_3, %c0_4] : memref<12x128xbf16, #tpu.memory_space<vmem>>, vector<12x128xbf16>
    %cst = arith.constant dense<0.000000e+00> : vector<8x128xf32>
    %5 = tpu.matmul %1, %4, %cst {dimension_numbers = #tpu.dot_dimension_numbers<[1], [0], [0], [1], [0, 0, 1, 1], [], []>} : vector<8x12xbf16>, vector<12x128xbf16>, vector<8x128xf32> -> vector<8x128xf32>
    %c0_5 = arith.constant 0 : index
    %c0_6 = arith.constant 0 : index
    %6 = vector.load %arg3[%c0_5, %c0_6] : memref<4x128xbf16, #tpu.memory_space<vmem>>, vector<4x128xbf16>
    %cst_7 = arith.constant dense<0.000000e+00> : vector<8x128xf32>
    %7 = tpu.matmul %3, %6, %cst_7 {dimension_numbers = #tpu.dot_dimension_numbers<[1], [0], [0], [1], [0, 0, 1, 1], [], []>} : vector<8x4xbf16>, vector<4x128xbf16>, vector<8x128xf32> -> vector<8x128xf32>
    %8 = arith.addf %5, %7 : vector<8x128xf32>
    %c0_8 = arith.constant 0 : index
    %c0_9 = arith.constant 0 : index
    %9 = vector.load %arg4[%c0_8, %c0_9] : memref<1x128xf32, #tpu.memory_space<vmem>>, vector<1x128xf32>
    %10 = vector.broadcast %9 : vector<1x128xf32> to vector<8x128xf32>
    %11 = arith.addf %8, %10 : vector<8x128xf32>
    %cst_10 = arith.constant 0.000000e+00 : f32
    %12 = vector.broadcast %cst_10 : f32 to vector<8x128xf32>
    %13 = arith.maximumf %11, %12 : vector<8x128xf32>
    %14 = arith.truncf %13 : vector<8x128xf32> to vector<8x128xbf16>
    %c0_11 = arith.constant 0 : index
    %c0_12 = arith.constant 0 : index
    %15 = vector.load %arg5[%c0_11, %c0_12] : memref<128x128xbf16, #tpu.memory_space<vmem>>, vector<128x128xbf16>
    %cst_13 = arith.constant dense<0.000000e+00> : vector<8x128xf32>
    %16 = tpu.matmul %14, %15, %cst_13 {dimension_numbers = #tpu.dot_dimension_numbers<[1], [0], [0], [1], [0, 0, 1, 1], [], []>} : vector<8x128xbf16>, vector<128x128xbf16>, vector<8x128xf32> -> vector<8x128xf32>
    %c0_14 = arith.constant 0 : index
    %c0_15 = arith.constant 0 : index
    %17 = vector.load %arg6[%c0_14, %c0_15] : memref<1x128xf32, #tpu.memory_space<vmem>>, vector<1x128xf32>
    %18 = vector.broadcast %17 : vector<1x128xf32> to vector<8x128xf32>
    %19 = arith.addf %16, %18 : vector<8x128xf32>
    %cst_16 = arith.constant 0.000000e+00 : f32
    %20 = vector.broadcast %cst_16 : f32 to vector<8x128xf32>
    %21 = arith.maximumf %19, %20 : vector<8x128xf32>
    %22 = arith.truncf %21 : vector<8x128xf32> to vector<8x128xbf16>
    %c0_17 = arith.constant 0 : index
    %c0_18 = arith.constant 0 : index
    %23 = vector.load %arg7[%c0_17, %c0_18] : memref<128x128xbf16, #tpu.memory_space<vmem>>, vector<128x128xbf16>
    %cst_19 = arith.constant dense<0.000000e+00> : vector<8x128xf32>
    %24 = tpu.matmul %22, %23, %cst_19 {dimension_numbers = #tpu.dot_dimension_numbers<[1], [0], [0], [1], [0, 0, 1, 1], [], []>} : vector<8x128xbf16>, vector<128x128xbf16>, vector<8x128xf32> -> vector<8x128xf32>
    %c0_20 = arith.constant 0 : index
    %c0_21 = arith.constant 0 : index
    %25 = vector.load %arg8[%c0_20, %c0_21] : memref<1x128xf32, #tpu.memory_space<vmem>>, vector<1x128xf32>
    %26 = vector.broadcast %25 : vector<1x128xf32> to vector<8x128xf32>
    %27 = arith.addf %24, %26 : vector<8x128xf32>
    %cst_22 = arith.constant 0.000000e+00 : f32
    %28 = vector.broadcast %cst_22 : f32 to vector<8x128xf32>
    %29 = arith.maximumf %27, %28 : vector<8x128xf32>
    %30 = arith.truncf %29 : vector<8x128xf32> to vector<8x128xbf16>
    %c0_23 = arith.constant 0 : index
    %c0_24 = arith.constant 0 : index
    %31 = vector.load %arg9[%c0_23, %c0_24] : memref<128x4xbf16, #tpu.memory_space<vmem>>, vector<128x4xbf16>
    %cst_25 = arith.constant dense<0.000000e+00> : vector<8x4xf32>
    %32 = tpu.matmul %30, %31, %cst_25 {dimension_numbers = #tpu.dot_dimension_numbers<[1], [0], [0], [1], [0, 0, 1, 1], [], []>} : vector<8x128xbf16>, vector<128x4xbf16>, vector<8x4xf32> -> vector<8x4xf32>
    %c0_26 = arith.constant 0 : index
    %c0_27 = arith.constant 0 : index
    %33 = vector.load %arg10[%c0_26, %c0_27] : memref<1x4xf32, #tpu.memory_space<vmem>>, vector<1x4xf32>
    %34 = vector.broadcast %33 : vector<1x4xf32> to vector<8x4xf32>
    %35 = arith.addf %32, %34 : vector<8x4xf32>
    %36 = tpu.transpose %35, [1, 0] : vector<8x4xf32> -> vector<4x8xf32>
    %c0_28 = arith.constant 0 : index
    %c0_29 = arith.constant 0 : index
    %37 = vector.load %arg11[%c0_28, %c0_29] : memref<4x8xf32, #tpu.memory_space<vmem>>, vector<4x8xf32>
    tpu.vector_store %arg11[%c0_28, %c0_29], %36 {strides = array<i32>} : memref<4x8xf32, #tpu.memory_space<vmem>>, vector<4x8xf32>,
    return
  }
}

</mosaic_0001>

<bundles_post_ra>
// kernel: tpu_custom_call.1
= control target key start
LH: loop header
LB: loop body
LE: loop exit
PB: predicated region body
PF: predicated region fallthrough
CT: control target
= control target key end

     0   :  { %16 = vsyncpa [#allocation3], 0  ;;  %s969_s0 = inlined_call_operand.vmem [shape: f32[8,12], index: 0, kind: input, shape index: {}]   ;;  %s970_s1 = inlined_call_operand.vmem [shape: f32[8,4], index: 1, kind: input, shape index: {}]   ;;  %s971_s2 = inlined_call_operand.vmem [shape: bf16[12,128], index: 2, kind: input, shape index: {}]   ;;  %s972_s3 = inlined_call_operand.vmem [shape: bf16[4,128], index: 3, kind: input, shape index: {}]   ;;  %s973_s4 = inlined_call_operand.vmem [shape: f32[1,128], index: 4, kind: input, shape index: {}]   ;;  %s974_s5 = inlined_call_operand.vmem [shape: bf16[128,128], index: 5, kind: input, shape index: {}]   ;;  %s975_s6 = inlined_call_operand.vmem [shape: f32[1,128], index: 6, kind: input, shape index: {}]   ;;  %s976_s7 = inlined_call_operand.hbm [shape: bf16[128,128], index: 7, kind: input, shape index: {}]   ;;  %s977_s8 = inlined_call_operand.vmem [shape: f32[1,128], index: 8, kind: input, shape index: {}]   ;;  %s978_s9 = inlined_call_operand.vmem [shape: bf16[128,4], index: 9, kind: input, shape index: {}]   ;;  %s979_s10 = inlined_call_operand.vmem [shape: f32[1,4], index: 10, kind: input, shape index: {}]   ;;  %s980_s11 = inlined_call_operand.hbm [shape: f32[4,8], index: 11, kind: output, shape index: {}]  }
   0x1   :  { %17 = vsyncpa [#allocation4], 0  ;;  %s771_s17 = smov [#allocation2]   ;;  %s723_s21 = scalar_lea.hbm %s976_s7, 1024 }
   0x2   :  { %s37_s18 = sshll.u32 %s771_s17, 4  ;;  %p724_p0 = scmp.ne.s32.totalorder %s976_s7, %s723_s21  ;;  %s38_s18 = int_to_ptr.vmem [resolvable:$true] %s37_s18 }
   0x3   :  { %p727_p1 = scmp.lt.u32.totalorder %s723_s21, %s976_s7 }
   0x5   :  { %p729_p2 = pnand %p727_p1, %p724_p0 }
   0x7   :  { %732 = shalt.err (!%p729_p2)
}
   0x8   :  { %s733_s26 = scalar_lea.vmem %s38_s18, 1024  ;;  %p738_p4 = scmp.lt.s32.totalorder %s38_s18, %s38_s18 }
   0x9   :  { %p734_p3 = scmp.ne.s32.totalorder %s38_s18, %s733_s26  ;;  %p739_p5 = scmp.lt.s32.totalorder %s733_s26, %s733_s26 }
   0xb   :  { %p740_p6 = por %p739_p5, %p738_p4 }
   0xd   :  { %p741_p7 = pnand %p740_p6, %p734_p3 }
   0xf   :  { %744 = shalt.err (!%p741_p7)
}
  0x10   :  { %s772_s27 = smov 64   ;;  %s773_s28 = smov 4  }
  0x11   :  { %43 = dma.hbm_to_vmem [thread:$0]  %s976_s7, 1024, %s38_s18, [#allocation3], %s772_s27, %s772_s27, %s773_s28  }
  0x12   :  { %767 = dma.done.wait [#allocation3], 1024  }
  0x13   :  { %768 = vsyncadd [#allocation3], 4294966272  ;;  %v774_v0 = vmov 0.0   ;;  %vm775_vm0 = vmmov 0   ;;  %vm65_vm1 = vcmask 1041408   ;;  %v56_v2 = vld [vmem:[%s970_s1] sm:$0xff] }
  0x14   :  { %620 = vmatprep.subr.bf16.mxu1 %v774_v0  ;;  %622 = vmatprep.mubr.msk.bf16.mxu1 %vm775_vm0, %v774_v0  ;;  %v60_v1 = vld [vmem:[%s972_s3] sm:$0x3]  ;;  %vm118_vm2 = vcmask 1045504   ;;  %v57_v4 = vpack.c.bf16 %v56_v2, %v56_v2  ;;  %vm61_vm3 = vcmask 31744   ;;  %v700_v8 = vld [vmem:[%s974_s5 + $0x8] sm:$0xff]   ;;  %vm114_vm4 = vcmask 97280  }
  0x15   :  { %632 = vmatprep.subr.bf16.mxu0 %v774_v0  ;;  %648 = vmatprep.mubr.msk.bf16.mxu0 %vm775_vm0, %v774_v0  ;;  %v67_v3 = vsel %vm65_vm1, %v60_v1, 0  ;;  %v698_v5 = vld [vmem:[%s971_s2] sm:$0x3f]   ;;  %v701_v10 = vld [vmem:[%s974_s5 + $0x10] sm:$0xff]   ;;  %v702_v12 = vld [vmem:[%s974_s5 + $0x18] sm:$0xff]   ;;  %vm541_vm5 = vcmask 60416  }
  0x16   :  { %621 = vmatpush3.bf16.msra.mxu1 %v67_v3  ;;  %v699_v6 = vld [vmem:[%s974_s5] sm:$0xff]   ;;  %v120_v7 = vsel %vm118_vm2, %v698_v5, 0  ;;  %v704_v14 = vld [vmem:[%s974_s5 + $0x28] sm:$0xff]   ;;  %v705_v15 = vld [vmem:[%s974_s5 + $0x30] sm:$0xff]  }
  0x17   :  { %626 = vmatprep.subr.bf16.mxu1 %v774_v0  ;;  %633 = vmatpush3.bf16.msra.mxu0 %v699_v6  ;;  %v54_v9 = vld [vmem:[%s969_s0] sm:$0xff]  ;;  %v706_v16 = vld [vmem:[%s974_s5 + $0x38] sm:$0xff]   ;;  %v708_v18 = vld [vmem:[#allocation2 + $0x8] sm:$0xff]  }
  0x18   :  { %634 = vmatprep.subr.bf16.mxu0 %v774_v0  ;;  %v55_v11 = vpack.c.bf16 %v54_v9, %v54_v9  ;;  %v703_v13 = vld [vmem:[%s974_s5 + $0x20] sm:$0xff]   ;;  %v709_v19 = vld [vmem:[#allocation2 + $0x10] sm:$0xff]   ;;  %v710_v20 = vld [vmem:[#allocation2 + $0x18] sm:$0xff]  }
  0x19   :  { %623 = vmatmul.mubr.msk.bf16.vlgmr.msra.gmra.mrb[0].mxu1 %vm61_vm3, %v57_v4  ;;  %v707_v17 = vld [vmem:[#allocation2] sm:$0xff]   ;;  %v712_v22 = vld [vmem:[#allocation2 + $0x28] sm:$0xff]   ;;  %v713_v36 = vld [vmem:[#allocation2 + $0x30] sm:$0xff]  }
  0x1a   :  { %627 = vmatpush3.bf16.msra.mxu1 %v120_v7  ;;  %628 = vmatprep.mubr.msk.bf16.mxu1 %vm775_vm0, %v774_v0  ;;  %v711_v21 = vld [vmem:[#allocation2 + $0x20] sm:$0xff]   ;;  %v714_v37 = vld [vmem:[#allocation2 + $0x38] sm:$0xff]   ;;  %v716_v39 = vld [vmem:[%s978_s9 + $0x8] sm:$0xff]  }
  0x1b   :  { %652 = vmatprep.subr.bf16.mxu1 %v774_v0  ;;  %635 = vmatpush3.bf16.msra.mxu0 %v700_v8  ;;  %v561_v28 = vld [vmem:[%s973_s4] ss:$0 sm:$0xff]  ;;  %v717_v40 = vld [vmem:[%s978_s9 + $0x10] sm:$0xff]   ;;  %v718_v41 = vld [vmem:[%s978_s9 + $0x18] sm:$0xff]  }
  0x1c   :  { %636 = vmatprep.subr.bf16.mxu0 %v774_v0  ;;  %v715_v38 = vld [vmem:[%s978_s9] sm:$0xff]   ;;  %v720_v43 = vld [vmem:[%s978_s9 + $0x28] sm:$0xff]   ;;  %v721_v52 = vld [vmem:[%s978_s9 + $0x30] sm:$0xff]  }
  0x1d   :  { %v719_v42 = vld [vmem:[%s978_s9 + $0x20] sm:$0xff]   ;;  %v722_v53 = vld [vmem:[%s978_s9 + $0x38] sm:$0xff]   ;;  %s776_s9 = smov [#allocation5]  }
  0x1e   :  { %v562_v44 = vld [vmem:[%s975_s6] ss:$0 sm:$0xff] }
  0x1f   :  { %637 = vmatpush3.bf16.msra.mxu0 %v701_v10  ;;  %v571_v54 = vld [vmem:[%s977_s8] ss:$0 sm:$0xff]  ;;  %s549_s8 = sshll.u32 %s776_s9, 4  ;;  %s550_s8 = int_to_ptr.vmem [resolvable:$true] %s549_s8 }
  0x20   :  { %638 = vmatprep.subr.bf16.mxu0 %v774_v0  ;;  %v580_v62 = vld [vmem:[%s979_s10] ss:$0 sm:$0xff]  ;;  %s745_s28 = scalar_lea.vmem %s550_s8, 64  ;;  %p750_p9 = scmp.lt.s32.totalorder %s550_s8, %s550_s8 }
  0x21   :  { %629 = vmatmul.mubr.msk.bf16.vlgmr.msra.gmra.mrb[4].mxu1 %vm114_vm4, %v55_v11  ;;  %p746_p8 = scmp.ne.s32.totalorder %s550_s8, %s745_s28  ;;  %p751_p10 = scmp.lt.s32.totalorder %s745_s28, %s745_s28 }
  0x22   :  { %668 = vmatprep.mubr.msk.bf16.mxu1 %vm775_vm0, %v774_v0  ;;  %653 = vmatpush3.bf16.msra.mxu1 %v707_v17 }
  0x23   :  { %639 = vmatpush3.bf16.msra.mxu0 %v702_v12  ;;  %654 = vmatprep.subr.bf16.mxu1 %v774_v0  ;;  %p752_p11 = por %p751_p10, %p750_p9 }
  0x24   :  { %640 = vmatprep.subr.bf16.mxu0 %v774_v0 }
  0x25   :  { %p753_p12 = pnand %p752_p11, %p746_p8 }
  0x26   :  { %655 = vmatpush3.bf16.msra.mxu1 %v708_v18 }
  0x27   :  { %641 = vmatpush3.bf16.msra.mxu0 %v703_v13  ;;  %656 = vmatprep.subr.bf16.mxu1 %v774_v0 }
  0x28   :  { %642 = vmatprep.subr.bf16.mxu0 %v774_v0 }
  0x2a   :  { %657 = vmatpush3.bf16.msra.mxu1 %v709_v19 }
  0x2b   :  { %643 = vmatpush3.bf16.msra.mxu0 %v704_v14  ;;  %658 = vmatprep.subr.bf16.mxu1 %v774_v0 }
  0x2c   :  { %644 = vmatprep.subr.bf16.mxu0 %v774_v0 }
  0x2e   :  { %659 = vmatpush3.bf16.msra.mxu1 %v710_v20 }
  0x2f   :  { %645 = vmatpush3.bf16.msra.mxu0 %v705_v15  ;;  %660 = vmatprep.subr.bf16.mxu1 %v774_v0 }
  0x30   :  { %646 = vmatprep.subr.bf16.mxu0 %v774_v0 }
  0x32   :  { %661 = vmatpush3.bf16.msra.mxu1 %v711_v21 }
  0x33   :  { %647 = vmatpush3.bf16.msra.mxu0 %v706_v16  ;;  %662 = vmatprep.subr.bf16.mxu1 %v774_v0 }
  0x34   :  { %672 = vmatprep.subr.bf16.mxu0 %v774_v0 }
  0x36   :  { %663 = vmatpush3.bf16.msra.mxu1 %v712_v22 }
  0x37   :  { %664 = vmatprep.subr.bf16.mxu1 %v774_v0 }
  0x3a   :  { %665 = vmatpush3.bf16.msra.mxu1 %v713_v36 }
  0x3b   :  { %666 = vmatprep.subr.bf16.mxu1 %v774_v0 }
  0x3e   :  { %667 = vmatpush3.bf16.msra.mxu1 %v714_v37 }
  0xec   :  { %v103_v23 = vpop.f32.mrb[0].mxu1 }
  0xed   :  { %v624_v24 = vpop.f32.mrb[1].mxu1 }
  0xee   :  { %v106_v25 = vpop.f32.mrb[2].mxu1 }
  0xef   :  { %v625_v26 = vpop.f32.mrb[3].mxu1 }
  0xf4   :  { %v156_v27 = vpop.f32.mrb[4].mxu1 }
  0xf5   :  { %v157_v29 = vadd.f32 %v156_v27, %v103_v23  ;;  %v630_v30 = vpop.f32.mrb[5].mxu1 }
  0xf6   :  { %v159_v31 = vpop.f32.mrb[6].mxu1 }
  0xf7   :  { %v169_v32 = vadd.f32 %v561_v28, %v157_v29  ;;  %v631_v33 = vpop.f32.mrb[7].mxu1 }
  0xf9   :  { %v170_v34 = vmax.f32 %v169_v32, 0.0 }
  0xfb   :  { %v171_v35 = vpack.c.bf16 %v170_v34, %v170_v34 }
  0xfd   :  { %649 = vmatmul.mubr.bf16.vlgmr.msra.gmra.mrb[0].mxu0 %v171_v35 }
  0xfe   :  { %688 = vmatprep.mubr.msk.bf16.mxu0 %vm775_vm0, %v774_v0  ;;  %673 = vmatpush3.bf16.msra.mxu0 %v715_v38 }
  0xff   :  { %674 = vmatprep.subr.bf16.mxu0 %v774_v0 }
 0x102   :  { %675 = vmatpush3.bf16.msra.mxu0 %v716_v39 }
 0x103   :  { %676 = vmatprep.subr.bf16.mxu0 %v774_v0 }
 0x106   :  { %677 = vmatpush3.bf16.msra.mxu0 %v717_v40 }
 0x107   :  { %678 = vmatprep.subr.bf16.mxu0 %v774_v0 }
 0x10a   :  { %679 = vmatpush3.bf16.msra.mxu0 %v718_v41 }
 0x10b   :  { %680 = vmatprep.subr.bf16.mxu0 %v774_v0 }
 0x10e   :  { %681 = vmatpush3.bf16.msra.mxu0 %v719_v42 }
 0x10f   :  { %682 = vmatprep.subr.bf16.mxu0 %v774_v0 }
 0x112   :  { %683 = vmatpush3.bf16.msra.mxu0 %v720_v43 }
 0x113   :  { %684 = vmatprep.subr.bf16.mxu0 %v774_v0 }
 0x116   :  { %685 = vmatpush3.bf16.msra.mxu0 %v721_v52 }
 0x117   :  { %686 = vmatprep.subr.bf16.mxu0 %v774_v0 }
 0x11a   :  { %687 = vmatpush3.bf16.msra.mxu0 %v722_v53 }
 0x1d0   :  { %v277_v45 = vpop.f32.mrb[0].mxu0 }
 0x1d1   :  { %v278_v46 = vadd.f32 %v562_v44, %v277_v45  ;;  %v650_v47 = vpop.f32.mrb[1].mxu0 }
 0x1d2   :  { %v280_v48 = vpop.f32.mrb[2].mxu0 }
 0x1d3   :  { %v283_v49 = vmax.f32 %v278_v46, 0.0  ;;  %v651_v50 = vpop.f32.mrb[3].mxu0 }
 0x1d5   :  { %v284_v51 = vpack.c.bf16 %v283_v49, %v283_v49 }
 0x1d7   :  { %669 = vmatmul.mubr.bf16.vlgmr.msra.gmra.mrb[8].mxu1 %v284_v51 }
 0x2aa   :  { %v390_v55 = vpop.f32.mrb[8].mxu1 }
 0x2ab   :  { %v391_v56 = vadd.f32 %v571_v54, %v390_v55  ;;  %v670_v57 = vpop.f32.mrb[9].mxu1 }
 0x2ac   :  { %v393_v58 = vpop.f32.mrb[10].mxu1 }
 0x2ad   :  { %v396_v59 = vmax.f32 %v391_v56, 0.0  ;;  %v671_v60 = vpop.f32.mrb[11].mxu1 }
 0x2af   :  { %v397_v61 = vpack.c.bf16 %v396_v59, %v396_v59 }
 0x2b1   :  { %689 = vmatmul.mubr.bf16.vlgmr.msra.gmra.mrb[4].mxu0 %v397_v61 }
 0x384   :  { %v503_v63 = vpop.f32.mrb[4].mxu0 }
 0x385   :  { %v690_v0 = vpop.f32.mrb[5].mxu0  ;;  %v504_v1 = vadd.f32 %v580_v62, %v503_v63 }
 0x386   :  { %v506_v2 = vpop.f32.mrb[6].mxu0 }
 0x387   :  { %509 = vxpose.xlu0.b32.start.end [1/1] (short) (narrow) %v504_v1, 8  ;;  %v691_v3 = vpop.f32.mrb[7].mxu0 }
 0x407   :  { %v525_v4 = vpop.trf.xlu0 }
 0x408   :  { %542 = vst.msk [vmem:[#allocation5] sm:$0xf] %vm541_vm5, %v525_v4 }
 0x409   :  { %756 = shalt.err (!%p753_p12)
}
 0x40a   :  { %s757_s30 = scalar_lea.hbm %s980_s11, 64 }
 0x40b   :  { %p758_p13 = scmp.ne.s32.totalorder %s980_s11, %s757_s30  ;;  %p761_p0 = scmp.lt.u32.totalorder %s757_s30, %s980_s11 }
 0x40d   :  { %p763_p1 = pnand %p761_p0, %p758_p13 }
 0x40f   :  { %766 = shalt.err (!%p763_p1)
}
 0x410   :  { %552 = dma.vmem_to_hbm [thread:$0]  %s550_s8, 64, %s980_s11, [#allocation4]  }
 0x411   :  { %769 = dma.done.wait [#allocation4], 64  }
 0x412   :  { %770 = vsyncadd [#allocation4], 4294967232 }
 0x413   :  { %556 = vsyncpa [#allocation3], 1 }
 0x414   :  { %557 = vsyncpa [#allocation4], 1 }

</bundles_post_ra>
